<compile_context>
chip_gen: v6e
topology: v6e:2x2x1
jax: 0.10.0
libtpu: 0.0.40
codegen_flags: <defaults>
</compile_context>

<pallas_src>
import functools

import jax
import jax.numpy as jnp
from jax.experimental import pallas as pl
from jax.experimental.pallas import tpu as pltpu


def _round_up(x, m):
    return (x + m - 1) // m * m


def _fused_mlp_kernel(x_ref, *refs, act_flags, negative_slope, matmul_dtype):
    """One row-tile of the fused multi-layer Linear(+LeakyReLU) block.

    x_ref : (TILE_N, Cin0_pad)            input activations (zero-padded, lane-dense)
    refs  : w0, b0, w1, b1, ..., o_ref    per-layer padded weights/biases + output
      w_i : (Cin_i_pad, Cout_i_pad)       pre-cast to the MXU dtype at init
      b_i : (1, Cout_i_pad) f32
      o   : (TILE_N, Cout_last_pad)
    """
    o_ref = refs[-1]
    wb = refs[:-1]

    y = x_ref[...]                                     # layer-0 lhs straight from input
    for i, apply_act in enumerate(act_flags):          # static loop over layers
        lhs = y
        if matmul_dtype is not None and lhs.dtype != matmul_dtype:
            lhs = lhs.astype(matmul_dtype)             # in-register activation cast only
        y = jnp.dot(lhs, wb[2 * i][...],
                    preferred_element_type=jnp.float32)        # MXU, f32 accumulation
        y = y + wb[2 * i + 1][...]                     # f32 bias epilogue (row broadcast)
        if apply_act:
            if negative_slope == 0.0:
                y = jnp.maximum(y, 0.0)                # ReLU: single VPU op
            else:
                y = jnp.where(y >= 0, y, negative_slope * y)   # LeakyReLU
    o_ref[...] = y.astype(o_ref.dtype)                 # last layer writes o_ref directly


def _choose_row_tile(n, itemsize, max_row_tile=512):
    """Balanced row tiles: >=2 tiles for megacore when n allows, minimal last-tile pad."""
    sublane = 16 if itemsize < 4 else 8                # sub-32-bit needs 16-row sublane tiles
    num_tiles = pl.cdiv(n, max_row_tile)
    if n >= 512:                                       # enough rows for both v7x TCs to matter
        num_tiles = max(num_tiles, 2)
    return _round_up(pl.cdiv(n, num_tiles), sublane)


def fused_linear_block(x, weights, biases, act_flags, negative_slope, *,
                       matmul_dtype=None, max_row_tile=512, single_buffer_weights=None):
    """y = act(...act(x @ W0 + b0)... @ W_{L-1} + b_{L-1}) fused in one pallas_call.

    Returns the padded (N_pad, Cout_last_pad) slab; the caller slices to the real shape.
    """
    n, c_in = x.shape
    cin_pad0 = weights[0].shape[0]
    cout_pad_last = weights[-1].shape[1]
    assert c_in <= cin_pad0

    itemsize = jnp.dtype(x.dtype).itemsize
    tile_n = _choose_row_tile(n, itemsize, max_row_tile)
    n_pad = _round_up(n, tile_n)
    x_pad = jnp.pad(x, ((0, n_pad - n), (0, cin_pad0 - c_in)))

    weight_bytes = sum(int(w.size) * w.dtype.itemsize for w in weights)
    bias_bytes = sum(int(b.size) * b.dtype.itemsize for b in biases)

    # Single-buffer the constant-index resident weights when they are big enough for the
    # extra buffer to matter (biggest lever on v7x's 64 MiB VMEM).
    if single_buffer_weights is None:
        single_buffer_weights = weight_bytes > (4 << 20)
    buffered_cls = getattr(pl, "Buffered", None)
    use_single = bool(single_buffer_weights) and buffered_cls is not None

    def _resident_spec(shape):
        zero_map = lambda i, _nd=len(shape): (0,) * _nd      # constant -> DMA'd once
        if use_single:
            return pl.BlockSpec(shape, zero_map, pipeline_mode=buffered_cls(1))
        return pl.BlockSpec(shape, zero_map)

    in_specs = [pl.BlockSpec((tile_n, cin_pad0), lambda i: (i, 0))]
    operands = [x_pad]
    for w, b in zip(weights, biases):
        in_specs.append(_resident_spec(w.shape))
        in_specs.append(_resident_spec(b.shape))
        operands.append(w)
        operands.append(b)

    # Explicit VMEM budget: double-buffered activation tiles + resident weights/biases
    # (x1 or x2 depending on buffering) + headroom for live f32 intermediates.
    widths = [weights[0].shape[0]] + [w.shape[1] for w in weights]
    act_headroom = 4 * tile_n * max(widths) * 4
    need = (2 * tile_n * cin_pad0 * itemsize
            + 2 * tile_n * cout_pad_last * itemsize
            + (1 if use_single else 2) * (weight_bytes + bias_bytes)
            + act_headroom)
    vmem_limit = int(min(max(2 * need, 32 << 20), 64 << 20))

    kernel = functools.partial(
        _fused_mlp_kernel,
        act_flags=tuple(act_flags),
        negative_slope=negative_slope,
        matmul_dtype=matmul_dtype,
    )
    return pl.pallas_call(
        kernel,
        out_shape=jax.ShapeDtypeStruct((n_pad, cout_pad_last), x.dtype),
        grid=(n_pad // tile_n,),
        in_specs=in_specs,
        out_specs=pl.BlockSpec((tile_n, cout_pad_last), lambda i: (i, 0)),
        compiler_params=pltpu.CompilerParams(
            dimension_semantics=("parallel",),       # rows shard across v7x's 2 TCs
            vmem_limit_bytes=vmem_limit),
    )(*operands)


class LinearBlock:
    """JAX/Pallas port of the PyTorch LinearBlock (default constructor args)."""

    def __init__(self, *layer_sizes, batch_norm=False, dropout=0.0,
                 last_linear=False, leaky=True, key=None, matmul_dtype=jnp.bfloat16):
        # TODO(synk): batch_norm=True and dropout>0 branches of the PyTorch module are
        # not implemented (never enabled by the default constructor args).
        assert not batch_norm and dropout == 0.0
        if key is None:
            key = jax.random.PRNGKey(0)
        self.layer_sizes = tuple(layer_sizes)
        self.negative_slope = 0.01 if leaky else 0.0   # LeakyReLU default / ReLU
        self.matmul_dtype = matmul_dtype               # bf16 MXU inputs by default; f32 acc
        n_layers = len(layer_sizes) - 1
        self.act_flags = tuple(
            not (last_linear and i + 1 >= n_layers) for i in range(n_layers))

        # Raw per-layer params (torch.nn.Linear default init), weight stored as
        # (C_in, C_out) == PyTorch (C_out, C_in) transposed.  Kept in f32 as the
        # reference copy.
        self.params = []
        for i in range(n_layers):
            c_in, c_out = layer_sizes[i], layer_sizes[i + 1]
            key, kw, kb = jax.random.split(key, 3)
            bound = 1.0 / (c_in ** 0.5)
            w = jax.random.uniform(kw, (c_in, c_out), jnp.float32, -bound, bound)
            b = jax.random.uniform(kb, (c_out,), jnp.float32, -bound, bound)
            self.params.append((w, b))

        # One-time PER-LAYER pad to lane-dense (128-multiple) widths + one-time cast of
        # the weights to the MXU dtype.  Zero padding is exact: padded input lanes hit
        # zero weight rows, padded output lanes get zero bias and stay zero through
        # LeakyReLU into the next layer's zero weight rows.
        self.w_pad, self.b_pad = [], []
        for w, b in self.params:
            cin_p = _round_up(w.shape[0], 128)
            cout_p = _round_up(w.shape[1], 128)
            wp = jnp.pad(w, ((0, cin_p - w.shape[0]), (0, cout_p - w.shape[1])))
            if matmul_dtype is not None:
                wp = wp.astype(matmul_dtype)
            self.w_pad.append(wp)
            self.b_pad.append(
                jnp.pad(b, (0, cout_p - b.shape[0])).reshape(1, cout_p).astype(jnp.float32))

    def __call__(self, x):
        n = x.shape[0]
        out = fused_linear_block(
            x, self.w_pad, self.b_pad, self.act_flags, self.negative_slope,
            matmul_dtype=self.matmul_dtype)
        return out[:n, :self.layer_sizes[-1]]


def _reference(block, x):
    ref = x
    for (w, b), act in zip(block.params, block.act_flags):
        ref = ref @ w + b
        if act:
            ref = jnp.where(ref >= 0, ref, block.negative_slope * ref)
    return ref


if __name__ == "__main__":
    key = jax.random.PRNGKey(0)
    k_in, k_params, k_in2 = jax.random.split(key, 3)

    # Small shapes consistent with the module: batch=8, hidden sizes (32, 64, 16).
    layer_sizes = (32, 64, 16)
    n = 8
    x = jax.random.normal(k_in, (n, layer_sizes[0]), dtype=jnp.float32)

    # 1) f32 MXU path, tiny batch (single row tile) -- tight tolerance.
    blk_f32 = LinearBlock(*layer_sizes, key=k_params, matmul_dtype=jnp.float32)
    out = jax.block_until_ready(blk_f32(x))
    ref = _reference(blk_f32, x)
    assert out.shape == (n, layer_sizes[-1])
    assert jnp.allclose(out, ref, atol=1e-4, rtol=1e-4), float(jnp.max(jnp.abs(out - ref)))

    # 2) default bf16-weight MXU path (f32 accumulation) -- looser tolerance.
    blk_bf16 = LinearBlock(*layer_sizes, key=k_params)   # matmul_dtype=bf16 default
    out_bf = jax.block_until_ready(blk_bf16(x))
    ref_bf = _reference(blk_bf16, x)
    assert out_bf.shape == (n, layer_sizes[-1])
    assert jnp.allclose(out_bf, ref_bf, atol=5e-2, rtol=5e-2), \
        float(jnp.max(jnp.abs(out_bf - ref_bf)))

    # 3) larger batch -> multi-tile parallel grid with balanced tiles, f32 path.
    n2 = 600
    x2 = jax.random.normal(k_in2, (n2, layer_sizes[0]), dtype=jnp.float32)
    out2 = jax.block_until_ready(blk_f32(x2))
    ref2 = _reference(blk_f32, x2)
    assert out2.shape == (n2, layer_sizes[-1])
    assert jnp.allclose(out2, ref2, atol=1e-4, rtol=1e-4), \
        float(jnp.max(jnp.abs(out2 - ref2)))

    print("KERNEL_OK")
</pallas_src>

<mosaic_0001>
module attributes {stable_mosaic.version = 11 : i64} {
  func.func @_fused_mlp_kernel(%arg0: i32, %arg1: memref<8x128xf32, #tpu.memory_space<vmem>>, %arg2: memref<128x128xf32, #tpu.memory_space<vmem>>, %arg3: memref<1x128xf32, #tpu.memory_space<vmem>>, %arg4: memref<128x128xf32, #tpu.memory_space<vmem>>, %arg5: memref<1x128xf32, #tpu.memory_space<vmem>>, %arg6: memref<8x128xf32, #tpu.memory_space<vmem>>) attributes {dimension_semantics = [#tpu.dimension_semantics<parallel>], iteration_bounds = array<i64: 1>, scalar_prefetch = 0 : i64, scratch_operands = 0 : i64, tpu.core_type = #tpu.core_type<tc>, window_params = [{transform_indices = @transform_0, window_bounds = array<i64: 8, 128>}, {pipeline_mode = #tpu.pipeline_mode<synchronous>, transform_indices = @transform_1, window_bounds = array<i64: 128, 128>}, {pipeline_mode = #tpu.pipeline_mode<synchronous>, transform_indices = @transform_2, window_bounds = array<i64: 1, 128>}, {pipeline_mode = #tpu.pipeline_mode<synchronous>, transform_indices = @transform_3, window_bounds = array<i64: 128, 128>}, {pipeline_mode = #tpu.pipeline_mode<synchronous>, transform_indices = @transform_4, window_bounds = array<i64: 1, 128>}, {transform_indices = @transform_5, window_bounds = array<i64: 8, 128>}]} {
    %c0 = arith.constant 0 : index
    %c0_0 = arith.constant 0 : index
    %0 = vector.load %arg1[%c0, %c0_0] : memref<8x128xf32, #tpu.memory_space<vmem>>, vector<8x128xf32>
    %c0_1 = arith.constant 0 : index
    %c0_2 = arith.constant 0 : index
    %1 = vector.load %arg2[%c0_1, %c0_2] : memref<128x128xf32, #tpu.memory_space<vmem>>, vector<128x128xf32>
    %cst = arith.constant dense<0.000000e+00> : vector<8x128xf32>
    %2 = tpu.matmul %0, %1, %cst {dimension_numbers = #tpu.dot_dimension_numbers<[1], [0], [0], [1], [0, 0, 1, 1], [], []>} : vector<8x128xf32>, vector<128x128xf32>, vector<8x128xf32> -> vector<8x128xf32>
    %c0_3 = arith.constant 0 : index
    %c0_4 = arith.constant 0 : index
    %3 = vector.load %arg3[%c0_3, %c0_4] : memref<1x128xf32, #tpu.memory_space<vmem>>, vector<1x128xf32>
    %4 = vector.broadcast %3 : vector<1x128xf32> to vector<8x128xf32>
    %5 = arith.addf %2, %4 : vector<8x128xf32>
    %cst_5 = arith.constant 0.000000e+00 : f32
    %6 = vector.broadcast %cst_5 : f32 to vector<8x128xf32>
    %7 = arith.cmpf oge, %5, %6 : vector<8x128xf32>
    %cst_6 = arith.constant 0.00999999977 : f32
    %8 = vector.broadcast %cst_6 : f32 to vector<8x128xf32>
    %9 = arith.mulf %8, %5 : vector<8x128xf32>
    %10 = arith.select %7, %5, %9 : vector<8x128xi1>, vector<8x128xf32>
    %c0_7 = arith.constant 0 : index
    %c0_8 = arith.constant 0 : index
    %11 = vector.load %arg4[%c0_7, %c0_8] : memref<128x128xf32, #tpu.memory_space<vmem>>, vector<128x128xf32>
    %cst_9 = arith.constant dense<0.000000e+00> : vector<8x128xf32>
    %12 = tpu.matmul %10, %11, %cst_9 {dimension_numbers = #tpu.dot_dimension_numbers<[1], [0], [0], [1], [0, 0, 1, 1], [], []>} : vector<8x128xf32>, vector<128x128xf32>, vector<8x128xf32> -> vector<8x128xf32>
    %c0_10 = arith.constant 0 : index
    %c0_11 = arith.constant 0 : index
    %13 = vector.load %arg5[%c0_10, %c0_11] : memref<1x128xf32, #tpu.memory_space<vmem>>, vector<1x128xf32>
    %14 = vector.broadcast %13 : vector<1x128xf32> to vector<8x128xf32>
    %15 = arith.addf %12, %14 : vector<8x128xf32>
    %cst_12 = arith.constant 0.000000e+00 : f32
    %16 = vector.broadcast %cst_12 : f32 to vector<8x128xf32>
    %17 = arith.cmpf oge, %15, %16 : vector<8x128xf32>
    %cst_13 = arith.constant 0.00999999977 : f32
    %18 = vector.broadcast %cst_13 : f32 to vector<8x128xf32>
    %19 = arith.mulf %18, %15 : vector<8x128xf32>
    %20 = arith.select %17, %15, %19 : vector<8x128xi1>, vector<8x128xf32>
    %c0_14 = arith.constant 0 : index
    %c0_15 = arith.constant 0 : index
    %21 = vector.load %arg6[%c0_14, %c0_15] : memref<8x128xf32, #tpu.memory_space<vmem>>, vector<8x128xf32>
    tpu.vector_store %arg6[%c0_14, %c0_15], %20 {strides = array<i32>} : memref<8x128xf32, #tpu.memory_space<vmem>>, vector<8x128xf32>,
    return
  }
  func.func @transform_0(%arg0: i32) -> (i32, i32) {
    %c0_i32 = arith.constant 0 : i32
    %c0_i32_0 = arith.constant 0 : i32
    return %arg0, %c0_i32 : i32, i32
  }
  func.func @transform_1(%arg0: i32) -> (i32, i32) {
    %c0_i32 = arith.constant 0 : i32
    %c0_i32_0 = arith.constant 0 : i32
    %c0_i32_1 = arith.constant 0 : i32
    return %c0_i32, %c0_i32_0 : i32, i32
  }
  func.func @transform_2(%arg0: i32) -> (i32, i32) {
    %c0_i32 = arith.constant 0 : i32
    %c0_i32_0 = arith.constant 0 : i32
    %c0_i32_1 = arith.constant 0 : i32
    return %c0_i32, %c0_i32_0 : i32, i32
  }
  func.func @transform_3(%arg0: i32) -> (i32, i32) {
    %c0_i32 = arith.constant 0 : i32
    %c0_i32_0 = arith.constant 0 : i32
    %c0_i32_1 = arith.constant 0 : i32
    return %c0_i32, %c0_i32_0 : i32, i32
  }
  func.func @transform_4(%arg0: i32) -> (i32, i32) {
    %c0_i32 = arith.constant 0 : i32
    %c0_i32_0 = arith.constant 0 : i32
    %c0_i32_1 = arith.constant 0 : i32
    return %c0_i32, %c0_i32_0 : i32, i32
  }
  func.func @transform_5(%arg0: i32) -> (i32, i32) {
    %c0_i32 = arith.constant 0 : i32
    %c0_i32_0 = arith.constant 0 : i32
    return %arg0, %c0_i32 : i32, i32
  }
}

</mosaic_0001>

<bundles_post_ra>
// kernel: tpu_custom_call.1
= control target key start
LH: loop header
LB: loop body
LE: loop exit
PB: predicated region body
PF: predicated region fallthrough
CT: control target
= control target key end

     0   :  { %10 = vsyncpa [#allocation3], 0  ;;  %s560_s0 = inlined_call_operand.hbm [shape: f32[8,128], index: 0, kind: input, shape index: {}]   ;;  %s561_s1 = inlined_call_operand.hbm [shape: f32[128,128], index: 1, kind: input, shape index: {}]   ;;  %s562_s2 = inlined_call_operand.vmem [shape: f32[1,128], index: 2, kind: input, shape index: {}]   ;;  %s563_s3 = inlined_call_operand.hbm [shape: f32[128,128], index: 3, kind: input, shape index: {}]   ;;  %s564_s4 = inlined_call_operand.vmem [shape: f32[1,128], index: 4, kind: input, shape index: {}]   ;;  %s565_s5 = inlined_call_operand.hbm [shape: f32[8,128], index: 5, kind: output, shape index: {}]  }
   0x1   :  { %11 = vsyncpa [#allocation6], 0 }
   0x2   :  { %12 = vsyncpa [#allocation4], 0  ;;  %s470_s18 = smov [#allocation5]  }
   0x3   :  { %s28_s19 = sshll.u32 %s470_s18, 4  ;;  %s29_s19 = int_to_ptr.vmem [resolvable:$true] %s28_s19 }
   0x4   :  { %s392_s20 = scalar_lea.vmem %s29_s19, 2048  ;;  %p397_p1 = scmp.lt.s32.totalorder %s29_s19, %s29_s19 }
   0x5   :  { %p393_p0 = scmp.ne.s32.totalorder %s29_s19, %s392_s20  ;;  %p398_p2 = scmp.lt.s32.totalorder %s392_s20, %s392_s20 }
   0x7   :  { %p399_p3 = por %p398_p2, %p397_p1 }
   0x9   :  { %p400_p4 = pnand %p399_p3, %p393_p0 }
   0xb   :  { %403 = shalt.err (!%p400_p4)
}
   0xc   :  { %s471_s21 = smov 128   ;;  %s472_s22 = smov 8  }
   0xd   :  { %34 = dma.hbm_to_vmem [thread:$0]  %s561_s1, 2048, %s29_s19, [#allocation6], %s471_s21, %s471_s21, %s472_s22  }
   0xe   :  { %s473_s25 = smov [#allocation2]   ;;  %s474_s27 = smov [#allocation7]  }
   0xf   :  { %s19_s26 = sshll.u32 %s473_s25, 4  ;;  %s42_s28 = sshll.u32 %s474_s27, 4  ;;  %s20_s26 = int_to_ptr.vmem [resolvable:$true] %s19_s26  ;;  %s43_s28 = int_to_ptr.vmem [resolvable:$true] %s42_s28 }
  0x10   :  { %s412_s29 = scalar_lea.vmem %s20_s26, 128  ;;  %p417_p6 = scmp.lt.s32.totalorder %s20_s26, %s20_s26 }
  0x11   :  { %p413_p5 = scmp.ne.s32.totalorder %s20_s26, %s412_s29  ;;  %p418_p7 = scmp.lt.s32.totalorder %s412_s29, %s412_s29 }
  0x13   :  { %p419_p8 = por %p418_p7, %p417_p6 }
  0x15   :  { %p420_p9 = pnand %p419_p8, %p413_p5 }
  0x17   :  { %423 = shalt.err (!%p420_p9)
}
  0x18   :  { %22 = dma.hbm_to_vmem [thread:$0]  %s560_s0, 128, %s20_s26, [#allocation3]  }
  0x19   :  { %s432_s7 = scalar_lea.vmem %s43_s28, 2048  ;;  %p437_p11 = scmp.lt.s32.totalorder %s43_s28, %s43_s28 }
  0x1a   :  { %p433_p10 = scmp.ne.s32.totalorder %s43_s28, %s432_s7  ;;  %p438_p12 = scmp.lt.s32.totalorder %s432_s7, %s432_s7 }
  0x1c   :  { %p439_p13 = por %p438_p12, %p437_p11 }
  0x1e   :  { %p440_p0 = pnand %p439_p13, %p433_p10 }
  0x20   :  { %443 = shalt.err (!%p440_p0)
}
  0x21   :  { %48 = dma.hbm_to_vmem [thread:$0]  %s563_s3, 2048, %s43_s28, [#allocation6], %s471_s21, %s471_s21, %s472_s22  }
  0x22   :  { %464 = dma.done.wait [#allocation3], 128  }
  0x23   :  { %465 = vsyncadd [#allocation3], 4294967168 }
  0x24   :  { %466 = dma.done.wait [#allocation6], 4096  }
  0x25   :  { %467 = vsyncadd [#allocation6], 4294963200  ;;  %v475_v0 = vmov 0.0   ;;  %vm476_vm0 = vmmov 0   ;;  %v76_v1 = vld [vmem:[#allocation5 + $0x78] sm:$0xff]  ;;  %v75_v2 = vld [vmem:[#allocation5 + $0x70] sm:$0xff] }
  0x26   :  { %306 = vmatprep.subr.mxu0 %v475_v0  ;;  %338 = vmatprep.mubr.msk.f32.mxu0 %vm476_vm0, %v475_v0  ;;  %v74_v3 = vld [vmem:[#allocation5 + $0x68] sm:$0xff]  ;;  %v73_v4 = vld [vmem:[#allocation5 + $0x60] sm:$0xff]  ;;  %v172_v5 = vld [vmem:[#allocation7 + $0x78] sm:$0xff]  ;;  %s477_s11 = smov [#allocation8]  }
  0x27   :  { %341 = vmatprep.subr.mxu1 %v475_v0  ;;  %373 = vmatprep.mubr.msk.f32.mxu1 %vm476_vm0, %v475_v0  ;;  %v72_v6 = vld [vmem:[#allocation5 + $0x58] sm:$0xff]  ;;  %v171_v7 = vld [vmem:[#allocation7 + $0x70] sm:$0xff]  ;;  %v170_v8 = vld [vmem:[#allocation7 + $0x68] sm:$0xff]  ;;  %s260_s12 = sshll.u32 %s477_s11, 4  ;;  %s261_s12 = int_to_ptr.vmem [resolvable:$true] %s260_s12 }
  0x28   :  { %307 = vmatpush3.msra.mxu0 %v76_v1  ;;  %342 = vmatpush3.msra.mxu1 %v172_v5  ;;  %v71_v9 = vld [vmem:[#allocation5 + $0x50] sm:$0xff]  ;;  %v169_v10 = vld [vmem:[#allocation7 + $0x60] sm:$0xff]  ;;  %v70_v11 = vld [vmem:[#allocation5 + $0x48] sm:$0xff]  ;;  %p449_p2 = scmp.lt.s32.totalorder %s261_s12, %s261_s12 }
  0x29   :  { %308 = vmatprep.subr.mxu0 %v475_v0  ;;  %343 = vmatprep.subr.mxu1 %v475_v0  ;;  %v168_v12 = vld [vmem:[#allocation7 + $0x58] sm:$0xff]  ;;  %v69_v13 = vld [vmem:[#allocation5 + $0x40] sm:$0xff]  ;;  %v167_v14 = vld [vmem:[#allocation7 + $0x50] sm:$0xff] }
  0x2a   :  { %309 = vmatpush3.msra.mxu0 %v75_v2  ;;  %344 = vmatpush3.msra.mxu1 %v171_v7  ;;  %v68_v15 = vld [vmem:[#allocation5 + $0x38] sm:$0xff]  ;;  %v166_v16 = vld [vmem:[#allocation7 + $0x48] sm:$0xff]  ;;  %v67_v17 = vld [vmem:[#allocation5 + $0x30] sm:$0xff] }
  0x2b   :  { %310 = vmatprep.subr.mxu0 %v475_v0  ;;  %345 = vmatprep.subr.mxu1 %v475_v0  ;;  %v165_v18 = vld [vmem:[#allocation7 + $0x40] sm:$0xff]  ;;  %v66_v19 = vld [vmem:[#allocation5 + $0x28] sm:$0xff]  ;;  %v164_v20 = vld [vmem:[#allocation7 + $0x38] sm:$0xff] }
  0x2c   :  { %311 = vmatpush3.msra.mxu0 %v74_v3  ;;  %346 = vmatpush3.msra.mxu1 %v170_v8  ;;  %v65_v21 = vld [vmem:[#allocation5 + $0x20] sm:$0xff]  ;;  %v163_v22 = vld [vmem:[#allocation7 + $0x30] sm:$0xff]  ;;  %v64_v23 = vld [vmem:[#allocation5 + $0x18] sm:$0xff] }
  0x2d   :  { %312 = vmatprep.subr.mxu0 %v475_v0  ;;  %347 = vmatprep.subr.mxu1 %v475_v0  ;;  %v162_v24 = vld [vmem:[#allocation7 + $0x28] sm:$0xff]  ;;  %v63_v25 = vld [vmem:[#allocation5 + $0x10] sm:$0xff]  ;;  %v161_v26 = vld [vmem:[#allocation7 + $0x20] sm:$0xff] }
  0x2e   :  { %313 = vmatpush3.msra.mxu0 %v73_v4  ;;  %348 = vmatpush3.msra.mxu1 %v169_v10  ;;  %v62_v27 = vld [vmem:[#allocation5 + $0x8] sm:$0xff]  ;;  %v160_v28 = vld [vmem:[#allocation7 + $0x18] sm:$0xff]  ;;  %v61_v29 = vld [vmem:[#allocation5] sm:$0xff] }
  0x2f   :  { %314 = vmatprep.subr.mxu0 %v475_v0  ;;  %349 = vmatprep.subr.mxu1 %v475_v0  ;;  %v60_v30 = vld [vmem:[#allocation2] sm:$0xff]  ;;  %v159_v31 = vld [vmem:[#allocation7 + $0x10] sm:$0xff]  ;;  %v158_v32 = vld [vmem:[#allocation7 + $0x8] sm:$0xff] }
  0x30   :  { %315 = vmatpush3.msra.mxu0 %v72_v6  ;;  %350 = vmatpush3.msra.mxu1 %v168_v12  ;;  %v157_v33 = vld [vmem:[#allocation7] sm:$0xff]  ;;  %v270_v34 = vld [vmem:[%s562_s2] ss:$0 sm:$0xff]  ;;  %s444_s2 = scalar_lea.vmem %s261_s12, 128 }
  0x31   :  { %316 = vmatprep.subr.mxu0 %v475_v0  ;;  %351 = vmatprep.subr.mxu1 %v475_v0  ;;  %v271_v40 = vld [vmem:[%s564_s4] ss:$0 sm:$0xff]  ;;  %p445_p1 = scmp.ne.s32.totalorder %s261_s12, %s444_s2  ;;  %p450_p3 = scmp.lt.s32.totalorder %s444_s2, %s444_s2 }
  0x32   :  { %317 = vmatpush3.msra.mxu0 %v71_v9  ;;  %352 = vmatpush3.msra.mxu1 %v167_v14 }
  0x33   :  { %318 = vmatprep.subr.mxu0 %v475_v0  ;;  %353 = vmatprep.subr.mxu1 %v475_v0  ;;  %p451_p4 = por %p450_p3, %p449_p2 }
  0x34   :  { %319 = vmatpush3.msra.mxu0 %v70_v11  ;;  %354 = vmatpush3.msra.mxu1 %v166_v16 }
  0x35   :  { %320 = vmatprep.subr.mxu0 %v475_v0  ;;  %355 = vmatprep.subr.mxu1 %v475_v0  ;;  %p452_p5 = pnand %p451_p4, %p445_p1 }
  0x36   :  { %321 = vmatpush3.msra.mxu0 %v69_v13  ;;  %356 = vmatpush3.msra.mxu1 %v165_v18 }
  0x37   :  { %322 = vmatprep.subr.mxu0 %v475_v0  ;;  %357 = vmatprep.subr.mxu1 %v475_v0 }
  0x38   :  { %323 = vmatpush3.msra.mxu0 %v68_v15  ;;  %358 = vmatpush3.msra.mxu1 %v164_v20 }
  0x39   :  { %324 = vmatprep.subr.mxu0 %v475_v0  ;;  %359 = vmatprep.subr.mxu1 %v475_v0 }
  0x3a   :  { %325 = vmatpush3.msra.mxu0 %v67_v17  ;;  %360 = vmatpush3.msra.mxu1 %v163_v22 }
  0x3b   :  { %326 = vmatprep.subr.mxu0 %v475_v0  ;;  %361 = vmatprep.subr.mxu1 %v475_v0 }
  0x3c   :  { %327 = vmatpush3.msra.mxu0 %v66_v19  ;;  %362 = vmatpush3.msra.mxu1 %v162_v24 }
  0x3d   :  { %328 = vmatprep.subr.mxu0 %v475_v0  ;;  %363 = vmatprep.subr.mxu1 %v475_v0 }
  0x3e   :  { %329 = vmatpush3.msra.mxu0 %v65_v21  ;;  %364 = vmatpush3.msra.mxu1 %v161_v26 }
  0x3f   :  { %330 = vmatprep.subr.mxu0 %v475_v0  ;;  %365 = vmatprep.subr.mxu1 %v475_v0 }
  0x40   :  { %331 = vmatpush3.msra.mxu0 %v64_v23  ;;  %366 = vmatpush3.msra.mxu1 %v160_v28 }
  0x41   :  { %332 = vmatprep.subr.mxu0 %v475_v0  ;;  %367 = vmatprep.subr.mxu1 %v475_v0 }
  0x42   :  { %333 = vmatpush3.msra.mxu0 %v63_v25  ;;  %368 = vmatpush3.msra.mxu1 %v159_v31 }
  0x43   :  { %334 = vmatprep.subr.mxu0 %v475_v0  ;;  %369 = vmatprep.subr.mxu1 %v475_v0 }
  0x44   :  { %335 = vmatpush3.msra.mxu0 %v62_v27  ;;  %370 = vmatpush3.msra.mxu1 %v158_v32 }
  0x45   :  { %336 = vmatprep.subr.mxu0 %v475_v0  ;;  %371 = vmatprep.subr.mxu1 %v475_v0 }
  0x46   :  { %337 = vmatpush3.msra.mxu0 %v61_v29  ;;  %372 = vmatpush3.msra.mxu1 %v157_v33 }
  0x47   :  { %339 = vmatmul.mubr.f32.vlgmr.msra.gmra.mxu0 %v60_v30 }
 0x107   :  { %v150_v35 = vpop.f32.mrf.mxu0 }
 0x108   :  { %v151_v36 = vadd.f32 %v270_v34, %v150_v35 }
 0x109   :  { %v340_v37 = vpop.f32.mrf.mxu0 }
 0x10a   :  { %v155_v38 = vmul.f32 0.01, %v151_v36  ;;  %vm154_vm1 = vcmp.ge.f32.partialorder %v151_v36, 0.0 }
 0x10c   :  { %v156_v39 = vsel %vm154_vm1, %v151_v36, %v155_v38 }
 0x10d   :  { %374 = vmatmul.mubr.f32.vlgmr.msra.gmra.mxu1 %v156_v39 }
 0x1cd   :  { %v246_v41 = vpop.f32.mrf.mxu1 }
 0x1ce   :  { %v247_v42 = vadd.f32 %v271_v40, %v246_v41 }
 0x1cf   :  { %v375_v43 = vpop.f32.mrf.mxu1 }
 0x1d0   :  { %v251_v44 = vmul.f32 0.01, %v247_v42  ;;  %vm250_vm2 = vcmp.ge.f32.partialorder %v247_v42, 0.0 }
 0x1d2   :  { %v252_v45 = vsel %vm250_vm2, %v247_v42, %v251_v44 }
 0x1d3   :  { %253 = vst [vmem:[#allocation8] sm:$0xff] %v252_v45 }
 0x1d4   :  { %455 = shalt.err (!%p452_p5)
}
 0x1d5   :  { %263 = dma.vmem_to_hbm [thread:$0]  %s261_s12, 128, %s565_s5, [#allocation4]  }
 0x1d6   :  { %468 = dma.done.wait [#allocation4], 128  }
 0x1d7   :  { %469 = vsyncadd [#allocation4], 4294967168 }
 0x1d8   :  { %267 = vsyncpa [#allocation3], 1 }
 0x1d9   :  { %268 = vsyncpa [#allocation6], 1 }
 0x1da   :  { %269 = vsyncpa [#allocation4], 1 }

</bundles_post_ra>
